<compile_context>
chip_gen: v6e
topology: v6e:2x2x1
jax: 0.10.0
libtpu: 0.0.40
codegen_flags: <defaults>
</compile_context>

<pallas_src>
import math

import jax
import jax.numpy as jnp
from jax.experimental import pallas as pl
from jax.experimental.pallas import tpu as pltpu


# ---------------------------------------------------------------------------
# Kernels
# ---------------------------------------------------------------------------

def _noisy_two_matmul_kernel(sigma_ref, x_ref, wmu_ref, weps_ref, bias_ref,
                             o_ref):
    """Small-batch noisy linear: two MXU matmuls, no O(K*N) VPU work.

    Accumulates directly into the f32 output block (resident across K axis).
    """
    k = pl.program_id(2)

    @pl.when(k == 0)
    def _():
        o_ref[...] = jnp.broadcast_to(bias_ref[...], o_ref.shape)

    sigma = sigma_ref[0]                              # f32 scalar from SMEM
    x = x_ref[...]                                    # bf16 [tm, tk]
    o_ref[...] += (
        jnp.dot(x, wmu_ref[...], preferred_element_type=jnp.float32)
        + sigma * jnp.dot(x, weps_ref[...], preferred_element_type=jnp.float32)
    )


def _noisy_weff_kernel(sigma_ref, x_ref, wmu_ref, weps_ref, bias_ref, o_ref):
    """Large-batch noisy linear: w_eff formed once per weight tile, 1 matmul."""
    k = pl.program_id(2)

    @pl.when(k == 0)
    def _():
        o_ref[...] = jnp.broadcast_to(bias_ref[...], o_ref.shape)

    sigma = sigma_ref[0].astype(wmu_ref.dtype)        # bf16 scalar
    w_eff = wmu_ref[...] + sigma * weps_ref[...]      # bf16 [tk, tn]
    o_ref[...] += jnp.dot(x_ref[...], w_eff,
                          preferred_element_type=jnp.float32)


def _clean_kernel(x_ref, wmu_ref, bias_ref, o_ref):
    """Denoised linear: never streams weight_eps / bias_eps."""
    k = pl.program_id(2)

    @pl.when(k == 0)
    def _():
        o_ref[...] = jnp.broadcast_to(bias_ref[...], o_ref.shape)

    o_ref[...] += jnp.dot(x_ref[...], wmu_ref[...],
                          preferred_element_type=jnp.float32)


# ---------------------------------------------------------------------------
# Wrapper
# ---------------------------------------------------------------------------

_COMPUTE_DTYPE = jnp.bfloat16
_LANE_CAP = 1024                    # tk / tn cap: ~11 MiB bf16 working set
_TM_CAP = 256
_VMEM_LIMIT_BYTES = 32 * 1024 * 1024


def _round_up(x, m):
    return ((x + m - 1) // m) * m


def _pad2d(a, rows, cols):
    r, c = a.shape
    if r == rows and c == cols:
        return a
    return jnp.pad(a, ((0, rows - r), (0, cols - c)))


def prepare_noisy_linear_params(weight_mu, weight_eps, bias_mu, bias_eps):
    """One-time weight preprocessing, hoisted out of the per-call path.

    Transposes weights to [in, out] (lane-dense output, no in-kernel
    transpose), pads to tile multiples, and casts the weight streams to bf16.
    Biases stay f32 (tiny).
    """
    out_f, in_f = weight_mu.shape
    tk = min(_LANE_CAP, _round_up(in_f, 128))
    tn = min(_LANE_CAP, _round_up(out_f, 128))
    Kp, Np = _round_up(in_f, tk), _round_up(out_f, tn)

    wmu_t = _pad2d(jnp.asarray(weight_mu, _COMPUTE_DTYPE).T, Kp, Np)
    weps_t = _pad2d(jnp.asarray(weight_eps, _COMPUTE_DTYPE).T, Kp, Np)
    bmu = _pad2d(jnp.asarray(bias_mu, jnp.float32).reshape(1, out_f), 1, Np)
    beps = _pad2d(jnp.asarray(bias_eps, jnp.float32).reshape(1, out_f), 1, Np)
    return dict(wmu_t=wmu_t, weps_t=weps_t, bias_mu=bmu, bias_eps=beps,
                in_features=in_f, out_features=out_f,
                Kp=Kp, Np=Np, tk=tk, tn=tn)


def adapt_noisy_linear(x, params, sigma, noisy=True):
    """Pallas implementation of AdaptNoisyLinear.forward.

    x:      [B, in_features] (any float dtype; cast to bf16 for the MXU)
    params: output of prepare_noisy_linear_params(...)
    sigma:  python float or scalar
    Returns f32 [B, out_features].
    """
    in_f, out_f = params["in_features"], params["out_features"]
    Kp, Np, tk, tn = params["Kp"], params["Np"], params["tk"], params["tn"]

    x = jnp.asarray(x)
    B = x.shape[0]
    assert x.shape[1] == in_f

    # bf16 sublane pack is 16 rows -> tm multiple of 16; cap at 256 so weight
    # streams are re-read fewer times and the MXU gets full-height pushes.
    tm = min(_TM_CAP, _round_up(B, 16))
    Mp = _round_up(B, tm)

    # Megacore friendliness: if both 'parallel' axes collapse to one block,
    # split N into >=2 lane-aligned blocks so a 2-TC chip (v7x) shards the
    # work.  Cheap on 1-TC chips (a few extra ~0.35us grid steps; total weight
    # HBM traffic is unchanged).
    if Mp // tm == 1 and Np // tn == 1 and Np >= 256:
        cands = [d for d in range(128, Np // 2 + 1, 128) if Np % d == 0]
        if cands:
            tn = max(cands)

    xp = _pad2d(x.astype(_COMPUTE_DTYPE), Mp, Kp)

    grid = (Mp // tm, Np // tn, Kp // tk)
    x_spec = pl.BlockSpec((tm, tk), lambda i, j, k: (i, k))
    w_spec = pl.BlockSpec((tk, tn), lambda i, j, k: (k, j))
    b_spec = pl.BlockSpec((1, tn), lambda i, j, k: (0, j))
    o_spec = pl.BlockSpec((tm, tn), lambda i, j, k: (i, j))
    cparams = pltpu.CompilerParams(
        dimension_semantics=("parallel", "parallel", "arbitrary"),
        vmem_limit_bytes=_VMEM_LIMIT_BYTES)
    out_shape = jax.ShapeDtypeStruct((Mp, Np), jnp.float32)

    if not noisy:
        out = pl.pallas_call(
            _clean_kernel,
            out_shape=out_shape,
            grid_spec=pltpu.PrefetchScalarGridSpec(
                num_scalar_prefetch=0,
                grid=grid,
                in_specs=[x_spec, w_spec, b_spec],
                out_specs=o_spec),
            compiler_params=cparams,
        )(xp, params["wmu_t"], params["bias_mu"])
        return out[:B, :out_f]

    sigma_arr = jnp.asarray(sigma, jnp.float32).reshape(1)
    # Fused effective bias: b_mu + sigma * b_eps -> one tiny f32 [1, Np] stream.
    bias_eff = params["bias_mu"] + sigma_arr[0] * params["bias_eps"]

    # Crossover re-swept for bf16: two-matmul form up to tm=128.
    kernel = _noisy_two_matmul_kernel if tm <= 128 else _noisy_weff_kernel
    sigma_spec = pl.BlockSpec(memory_space=pltpu.MemorySpace.SMEM)

    out = pl.pallas_call(
        kernel,
        out_shape=out_shape,
        grid_spec=pltpu.PrefetchScalarGridSpec(
            num_scalar_prefetch=0,
            grid=grid,
            in_specs=[sigma_spec, x_spec, w_spec, w_spec, b_spec],
            out_specs=o_spec),
        compiler_params=cparams,
    )(sigma_arr, xp, params["wmu_t"], params["weps_t"], bias_eff)
    return out[:B, :out_f]


# ---------------------------------------------------------------------------
# Self-test
# ---------------------------------------------------------------------------

if __name__ == "__main__":
    STD_INIT = 0.1

    def make_layer(key, batch, in_f, out_f):
        k_x, k_wmu, k_weps, k_bmu, k_beps = jax.random.split(key, 5)
        bound = 1.0 / math.sqrt(in_f)
        x = jax.random.normal(k_x, (batch, in_f), jnp.float32)
        wmu = jax.random.uniform(k_wmu, (out_f, in_f), jnp.float32, -bound, bound)
        bmu = jax.random.uniform(k_bmu, (out_f,), jnp.float32, -bound, bound)
        weps = jax.random.normal(k_weps, (out_f, in_f), jnp.float32)  # resample()
        beps = jax.random.normal(k_beps, (out_f,), jnp.float32)
        return x, wmu, weps, bmu, beps

    def reference(x, wmu, weps, bmu, beps, sigma, noisy):
        w = wmu + sigma * weps if noisy else wmu
        b = bmu + sigma * beps if noisy else bmu
        return jnp.dot(x, w.T, precision=jax.lax.Precision.HIGHEST) + b

    def check(y, y_ref, name):
        # bf16 matmul inputs (f32 accumulation) -> relaxed tolerances.
        ok = jnp.allclose(y, y_ref, atol=5e-2, rtol=2e-2)
        assert bool(ok), (name, float(jnp.max(jnp.abs(y - y_ref))))

    key = jax.random.PRNGKey(0)
    k1, k2, k3 = jax.random.split(key, 3)

    # 1) Small shape consistent with the module: batch=8, in=32, out=16.
    #    Exercises the two-matmul noisy kernel and the clean (denoise) kernel.
    x, wmu, weps, bmu, beps = make_layer(k1, 8, 32, 16)
    p = prepare_noisy_linear_params(wmu, weps, bmu, beps)
    y_noisy = jax.block_until_ready(adapt_noisy_linear(x, p, STD_INIT, noisy=True))
    y_clean = jax.block_until_ready(adapt_noisy_linear(x, p, STD_INIT, noisy=False))
    assert y_noisy.shape == (8, 16) and y_clean.shape == (8, 16)
    check(y_noisy, reference(x, wmu, weps, bmu, beps, STD_INIT, True), "small-noisy")
    check(y_clean, reference(x, wmu, weps, bmu, beps, STD_INIT, False), "small-clean")

    # 2) Larger shape: w_eff kernel (tm=256) + megacore N-split (grid 1x3x1).
    x2, wmu2, weps2, bmu2, beps2 = make_layer(k2, 256, 1024, 384)
    p2 = prepare_noisy_linear_params(wmu2, weps2, bmu2, beps2)
    y2 = jax.block_until_ready(adapt_noisy_linear(x2, p2, STD_INIT, noisy=True))
    assert y2.shape == (256, 384)
    check(y2, reference(x2, wmu2, weps2, bmu2, beps2, STD_INIT, True), "large-weff")

    # 3) Multi-K reduction with K zero-padding (K=1536 -> Kp=2048, 2 K blocks),
    #    two-matmul kernel, N split into 2 blocks.
    x3, wmu3, weps3, bmu3, beps3 = make_layer(k3, 40, 1536, 256)
    p3 = prepare_noisy_linear_params(wmu3, weps3, bmu3, beps3)
    y3 = jax.block_until_ready(adapt_noisy_linear(x3, p3, STD_INIT, noisy=True))
    assert y3.shape == (40, 256)
    check(y3, reference(x3, wmu3, weps3, bmu3, beps3, STD_INIT, True), "small-multiK")

    print("KERNEL_OK")
</pallas_src>

<mosaic_0001>
module attributes {stable_mosaic.version = 11 : i64} {
  func.func @_noisy_two_matmul_kernel(%arg0: i32, %arg1: i32, %arg2: i32, %arg3: memref<1xf32, #tpu.memory_space<smem>>, %arg4: memref<16x128xbf16, #tpu.memory_space<vmem>>, %arg5: memref<128x128xbf16, #tpu.memory_space<vmem>>, %arg6: memref<128x128xbf16, #tpu.memory_space<vmem>>, %arg7: memref<1x128xf32, #tpu.memory_space<vmem>>, %arg8: memref<16x128xf32, #tpu.memory_space<vmem>>) attributes {dimension_semantics = [#tpu.dimension_semantics<parallel>, #tpu.dimension_semantics<parallel>, #tpu.dimension_semantics<arbitrary>], iteration_bounds = array<i64: 1, 1, 1>, scalar_prefetch = 0 : i64, scratch_operands = 0 : i64, tpu.core_type = #tpu.core_type<tc>, window_params = [{transform_indices = @transform_0, window_bounds = array<i64: 1>}, {transform_indices = @transform_1, window_bounds = array<i64: 16, 128>}, {transform_indices = @transform_2, window_bounds = array<i64: 128, 128>}, {transform_indices = @transform_3, window_bounds = array<i64: 128, 128>}, {transform_indices = @transform_4, window_bounds = array<i64: 1, 128>}, {transform_indices = @transform_5, window_bounds = array<i64: 16, 128>}]} {
    %c0_i32 = arith.constant 0 : i32
    %0 = arith.cmpi eq, %arg2, %c0_i32 : i32
    %1 = arith.extui %0 : i1 to i32
    %c0_i32_0 = arith.constant 0 : i32
    %2 = arith.cmpi ne, %1, %c0_i32_0 : i32
    scf.if %2 {
      %c0_12 = arith.constant 0 : index
      %c0_13 = arith.constant 0 : index
      %15 = vector.load %arg7[%c0_12, %c0_13] : memref<1x128xf32, #tpu.memory_space<vmem>>, vector<1x128xf32>
      %16 = vector.shape_cast %15 : vector<1x128xf32> to vector<1x128xf32>
      %17 = vector.broadcast %16 : vector<1x128xf32> to vector<16x128xf32>
      %c0_14 = arith.constant 0 : index
      %c0_15 = arith.constant 0 : index
      %18 = vector.load %arg8[%c0_14, %c0_15] : memref<16x128xf32, #tpu.memory_space<vmem>>, vector<16x128xf32>
      tpu.vector_store %arg8[%c0_14, %c0_15], %17 {strides = array<i32>} : memref<16x128xf32, #tpu.memory_space<vmem>>, vector<16x128xf32>,
    } else {
    }
    %c0 = arith.constant 0 : index
    %3 = memref.load %arg3[%c0] : memref<1xf32, #tpu.memory_space<smem>>
    %c0_1 = arith.constant 0 : index
    %c0_2 = arith.constant 0 : index
    %4 = vector.load %arg4[%c0_1, %c0_2] : memref<16x128xbf16, #tpu.memory_space<vmem>>, vector<16x128xbf16>
    %c0_3 = arith.constant 0 : index
    %c0_4 = arith.constant 0 : index
    %5 = vector.load %arg8[%c0_3, %c0_4] : memref<16x128xf32, #tpu.memory_space<vmem>>, vector<16x128xf32>
    %c0_5 = arith.constant 0 : index
    %c0_6 = arith.constant 0 : index
    %6 = vector.load %arg5[%c0_5, %c0_6] : memref<128x128xbf16, #tpu.memory_space<vmem>>, vector<128x128xbf16>
    %cst = arith.constant dense<0.000000e+00> : vector<16x128xf32>
    %7 = tpu.matmul %4, %6, %cst {dimension_numbers = #tpu.dot_dimension_numbers<[1], [0], [0], [1], [0, 0, 1, 1], [], []>} : vector<16x128xbf16>, vector<128x128xbf16>, vector<16x128xf32> -> vector<16x128xf32>
    %c0_7 = arith.constant 0 : index
    %c0_8 = arith.constant 0 : index
    %8 = vector.load %arg6[%c0_7, %c0_8] : memref<128x128xbf16, #tpu.memory_space<vmem>>, vector<128x128xbf16>
    %cst_9 = arith.constant dense<0.000000e+00> : vector<16x128xf32>
    %9 = tpu.matmul %4, %8, %cst_9 {dimension_numbers = #tpu.dot_dimension_numbers<[1], [0], [0], [1], [0, 0, 1, 1], [], []>} : vector<16x128xbf16>, vector<128x128xbf16>, vector<16x128xf32> -> vector<16x128xf32>
    %10 = vector.broadcast %3 : f32 to vector<16x128xf32>
    %11 = arith.mulf %10, %9 : vector<16x128xf32>
    %12 = arith.addf %7, %11 : vector<16x128xf32>
    %13 = arith.addf %5, %12 : vector<16x128xf32>
    %c0_10 = arith.constant 0 : index
    %c0_11 = arith.constant 0 : index
    %14 = vector.load %arg8[%c0_10, %c0_11] : memref<16x128xf32, #tpu.memory_space<vmem>>, vector<16x128xf32>
    tpu.vector_store %arg8[%c0_10, %c0_11], %13 {strides = array<i32>} : memref<16x128xf32, #tpu.memory_space<vmem>>, vector<16x128xf32>,
    return
  }
  func.func @transform_0(%arg0: i32, %arg1: i32, %arg2: i32) -> i32 {
    %c0_i32 = arith.constant 0 : i32
    %c0_i32_0 = arith.constant 0 : i32
    return %c0_i32 : i32
  }
  func.func @transform_1(%arg0: i32, %arg1: i32, %arg2: i32) -> (i32, i32) {
    %c0_i32 = arith.constant 0 : i32
    return %arg0, %arg2 : i32, i32
  }
  func.func @transform_2(%arg0: i32, %arg1: i32, %arg2: i32) -> (i32, i32) {
    %c0_i32 = arith.constant 0 : i32
    return %arg2, %arg1 : i32, i32
  }
  func.func @transform_3(%arg0: i32, %arg1: i32, %arg2: i32) -> (i32, i32) {
    %c0_i32 = arith.constant 0 : i32
    return %arg2, %arg1 : i32, i32
  }
  func.func @transform_4(%arg0: i32, %arg1: i32, %arg2: i32) -> (i32, i32) {
    %c0_i32 = arith.constant 0 : i32
    %c0_i32_0 = arith.constant 0 : i32
    return %c0_i32, %arg1 : i32, i32
  }
  func.func @transform_5(%arg0: i32, %arg1: i32, %arg2: i32) -> (i32, i32) {
    %c0_i32 = arith.constant 0 : i32
    return %arg0, %arg1 : i32, i32
  }
}

</mosaic_0001>

<bundles_post_ra>
// kernel: tpu_custom_call.1
= control target key start
LH: loop header
LB: loop body
LE: loop exit
PB: predicated region body
PF: predicated region fallthrough
CT: control target
= control target key end

     0   :  { %11 = vsyncpa [#allocation4], 0  ;;  %s570_s0 = inlined_call_operand.<no memory space> [shape: f32[1], index: 0, kind: input, shape index: {}]   ;;  %s571_s1 = inlined_call_operand.hbm [shape: bf16[16,128], index: 1, kind: input, shape index: {}]   ;;  %s572_s2 = inlined_call_operand.hbm [shape: bf16[128,128], index: 2, kind: input, shape index: {}]   ;;  %s573_s3 = inlined_call_operand.hbm [shape: bf16[128,128], index: 3, kind: input, shape index: {}]   ;;  %s574_s4 = inlined_call_operand.vmem [shape: f32[1,128], index: 4, kind: input, shape index: {}]   ;;  %s575_s5 = inlined_call_operand.hbm [shape: f32[16,128], index: 5, kind: output, shape index: {}]  }
   0x1   :  { %12 = vsyncpa [#allocation7], 0 }
   0x2   :  { %13 = vsyncpa [#allocation5], 0  ;;  %s512_s18 = smov [#allocation6]   ;;  %s513_s20 = smov [#allocation3]  }
   0x3   :  { %s33_s19 = sshll.u32 %s512_s18, 4  ;;  %s21_s21 = sshll.u32 %s513_s20, 4  ;;  %s34_s19 = int_to_ptr.vmem [resolvable:$true] %s33_s19  ;;  %s22_s21 = int_to_ptr.vmem [resolvable:$true] %s21_s21 }
   0x4   :  { %s434_s22 = scalar_lea.vmem %s34_s19, 1024  ;;  %p439_p1 = scmp.lt.s32.totalorder %s34_s19, %s34_s19 }
   0x5   :  { %p435_p0 = scmp.ne.s32.totalorder %s34_s19, %s434_s22  ;;  %p440_p2 = scmp.lt.s32.totalorder %s434_s22, %s434_s22 }
   0x7   :  { %p441_p3 = por %p440_p2, %p439_p1 }
   0x9   :  { %p442_p4 = pnand %p441_p3, %p435_p0 }
   0xb   :  { %445 = shalt.err (!%p442_p4)
}
   0xc   :  { %s514_s23 = smov 64   ;;  %s515_s24 = smov 4  }
   0xd   :  { %39 = dma.hbm_to_vmem [thread:$0]  %s572_s2, 1024, %s34_s19, [#allocation7], %s514_s23, %s514_s23, %s515_s24  }
   0xe   :  { %s454_s27 = scalar_lea.vmem %s22_s21, 128  ;;  %p459_p6 = scmp.lt.s32.totalorder %s22_s21, %s22_s21 }
   0xf   :  { %p455_p5 = scmp.ne.s32.totalorder %s22_s21, %s454_s27  ;;  %p460_p7 = scmp.lt.s32.totalorder %s454_s27, %s454_s27 }
  0x11   :  { %p461_p8 = por %p460_p7, %p459_p6 }
  0x13   :  { %p462_p9 = pnand %p461_p8, %p455_p5 }
  0x15   :  { %465 = shalt.err (!%p462_p9)
}
  0x16   :  { %27 = dma.hbm_to_vmem [thread:$0]  %s571_s1, 128, %s22_s21, [#allocation4], %s514_s23, %s514_s23, %s515_s24  }
  0x17   :  { %s516_s30 = smov [#allocation8]  }
  0x18   :  { %s45_s6 = sshll.u32 %s516_s30, 4  ;;  %s46_s6 = int_to_ptr.vmem [resolvable:$true] %s45_s6 }
  0x19   :  { %s474_s7 = scalar_lea.vmem %s46_s6, 1024  ;;  %p479_p11 = scmp.lt.s32.totalorder %s46_s6, %s46_s6 }
  0x1a   :  { %p475_p10 = scmp.ne.s32.totalorder %s46_s6, %s474_s7  ;;  %p480_p12 = scmp.lt.s32.totalorder %s474_s7, %s474_s7 }
  0x1c   :  { %p481_p13 = por %p480_p12, %p479_p11 }
  0x1e   :  { %p482_p0 = pnand %p481_p13, %p475_p10 }
  0x20   :  { %485 = shalt.err (!%p482_p0)
}
  0x21   :  { %51 = dma.hbm_to_vmem [thread:$0]  %s573_s3, 1024, %s46_s6, [#allocation7], %s514_s23, %s514_s23, %s515_s24  }
  0x22   :  { %506 = dma.done.wait [#allocation4], 128  }
  0x23   :  { %507 = vsyncadd [#allocation4], 4294967168 }
  0x24   :  { %508 = dma.done.wait [#allocation7], 2048  }
  0x25   :  { %509 = vsyncadd [#allocation7], 4294965248  ;;  %v517_v0 = vmov 0.0   ;;  %vm518_vm0 = vmmov 0   ;;  %v409_v1 = vld [vmem:[#allocation8 + $0x38] sm:$0xff]   ;;  %v411_v3 = vld [vmem:[#allocation8 + $0x30] sm:$0xff]   ;;  %v209_v18 = vstv %s570_s0 }
  0x26   :  { %359 = vmatprep.subr.bf16.mxu0 %v517_v0  ;;  %379 = vmatprep.subr.bf16.mxu1 %v517_v0  ;;  %v410_v2 = vld [vmem:[#allocation6 + $0x38] sm:$0xff]   ;;  %v412_v4 = vld [vmem:[#allocation6 + $0x30] sm:$0xff]   ;;  %v413_v5 = vld [vmem:[#allocation8 + $0x28] sm:$0xff]   ;;  %s519_s11 = smov [#allocation9]  }
  0x27   :  { %375 = vmatprep.mubr.msk.bf16.mxu0 %vm518_vm0, %v517_v0  ;;  %395 = vmatprep.mubr.msk.bf16.mxu1 %vm518_vm0, %v517_v0  ;;  %v414_v6 = vld [vmem:[#allocation6 + $0x28] sm:$0xff]   ;;  %v415_v7 = vld [vmem:[#allocation8 + $0x20] sm:$0xff]   ;;  %v417_v9 = vld [vmem:[#allocation8 + $0x18] sm:$0xff]   ;;  %s310_s12 = sshll.u32 %s519_s11, 4  ;;  %s311_s12 = int_to_ptr.vmem [resolvable:$true] %s310_s12 }
  0x28   :  { %360 = vmatpush3.bf16.msra.mxu0 %v409_v1  ;;  %380 = vmatpush3.bf16.msra.mxu1 %v410_v2  ;;  %v416_v8 = vld [vmem:[#allocation6 + $0x20] sm:$0xff]   ;;  %v418_v10 = vld [vmem:[#allocation6 + $0x18] sm:$0xff]   ;;  %v419_v11 = vld [vmem:[#allocation8 + $0x10] sm:$0xff]   ;;  %s486_s0 = scalar_lea.vmem %s311_s12, 256  ;;  %p491_p2 = scmp.lt.s32.totalorder %s311_s12, %s311_s12 }
  0x29   :  { %361 = vmatprep.subr.bf16.mxu0 %v517_v0  ;;  %381 = vmatprep.subr.bf16.mxu1 %v517_v0  ;;  %v420_v12 = vld [vmem:[#allocation6 + $0x10] sm:$0xff]   ;;  %v421_v13 = vld [vmem:[#allocation8 + $0x8] sm:$0xff]   ;;  %v423_v15 = vld [vmem:[#allocation8] sm:$0xff]   ;;  %p487_p1 = scmp.ne.s32.totalorder %s311_s12, %s486_s0  ;;  %p492_p3 = scmp.lt.s32.totalorder %s486_s0, %s486_s0 }
  0x2a   :  { %v422_v14 = vld [vmem:[#allocation6 + $0x8] sm:$0xff]   ;;  %v424_v16 = vld [vmem:[#allocation6] sm:$0xff]   ;;  %v425_v17 = vld [vmem:[#allocation3] sm:$0xff]  }
  0x2b   :  { %v323_v22 = vld [vmem:[%s574_s4] ss:$0 sm:$0xff]  ;;  %p493_p4 = por %p492_p3, %p491_p2 }
  0x2c   :  { %362 = vmatpush3.bf16.msra.mxu0 %v411_v3  ;;  %382 = vmatpush3.bf16.msra.mxu1 %v412_v4 }
  0x2d   :  { %363 = vmatprep.subr.bf16.mxu0 %v517_v0  ;;  %383 = vmatprep.subr.bf16.mxu1 %v517_v0  ;;  %p494_p5 = pnand %p493_p4, %p487_p1 }
  0x30   :  { %364 = vmatpush3.bf16.msra.mxu0 %v413_v5  ;;  %384 = vmatpush3.bf16.msra.mxu1 %v414_v6 }
  0x31   :  { %365 = vmatprep.subr.bf16.mxu0 %v517_v0  ;;  %385 = vmatprep.subr.bf16.mxu1 %v517_v0 }
  0x34   :  { %366 = vmatpush3.bf16.msra.mxu0 %v415_v7  ;;  %386 = vmatpush3.bf16.msra.mxu1 %v416_v8 }
  0x35   :  { %367 = vmatprep.subr.bf16.mxu0 %v517_v0  ;;  %387 = vmatprep.subr.bf16.mxu1 %v517_v0 }
  0x38   :  { %368 = vmatpush3.bf16.msra.mxu0 %v417_v9  ;;  %388 = vmatpush3.bf16.msra.mxu1 %v418_v10 }
  0x39   :  { %369 = vmatprep.subr.bf16.mxu0 %v517_v0  ;;  %389 = vmatprep.subr.bf16.mxu1 %v517_v0 }
  0x3c   :  { %370 = vmatpush3.bf16.msra.mxu0 %v419_v11  ;;  %390 = vmatpush3.bf16.msra.mxu1 %v420_v12 }
  0x3d   :  { %371 = vmatprep.subr.bf16.mxu0 %v517_v0  ;;  %391 = vmatprep.subr.bf16.mxu1 %v517_v0 }
  0x40   :  { %372 = vmatpush3.bf16.msra.mxu0 %v421_v13  ;;  %392 = vmatpush3.bf16.msra.mxu1 %v422_v14 }
  0x41   :  { %373 = vmatprep.subr.bf16.mxu0 %v517_v0  ;;  %393 = vmatprep.subr.bf16.mxu1 %v517_v0 }
  0x44   :  { %374 = vmatpush3.bf16.msra.mxu0 %v423_v15  ;;  %394 = vmatpush3.bf16.msra.mxu1 %v424_v16 }
  0x47   :  { %376 = vmatmul.mubr.bf16.vlgmr.msra.gmra.mxu0 %v425_v17  ;;  %396 = vmatmul.mubr.bf16.vlgmr.msra.gmra.mxu1 %v425_v17 }
 0x107   :  { %v202_v19 = vpop.f32.mrf.mxu0  ;;  %v294_v21 = vpop.f32.mrf.mxu1 }
 0x108   :  { %v210_v20 = vmul.f32 %v209_v18, %v202_v19 }
 0x109   :  { %v377_v23 = vpop.f32.mrf.mxu0  ;;  %v397_v25 = vpop.f32.mrf.mxu1 }
 0x10a   :  { %v295_v24 = vadd.f32 %v294_v21, %v210_v20 }
 0x10b   :  { %v205_v26 = vpop.f32.mrf.mxu0  ;;  %v297_v29 = vpop.f32.mrf.mxu1 }
 0x10c   :  { %v301_v27 = vadd.f32 %v323_v22, %v295_v24  ;;  %v211_v28 = vmul.f32 %v209_v18, %v205_v26 }
 0x10d   :  { %v378_v30 = vpop.f32.mrf.mxu0  ;;  %v398_v32 = vpop.f32.mrf.mxu1 }
 0x10e   :  { %303 = vst [vmem:[#allocation9] sm:$0xff] %v301_v27  ;;  %v298_v31 = vadd.f32 %v297_v29, %v211_v28 }
 0x110   :  { %v302_v33 = vadd.f32 %v323_v22, %v298_v31 }
 0x112   :  { %304 = vst [vmem:[#allocation9 + $0x8] sm:$0xff] %v302_v33 }
 0x113   :  { %497 = shalt.err (!%p494_p5)
}
 0x114   :  { %s520_s4 = smov 128   ;;  %s521_s13 = smov 8  }
 0x115   :  { %316 = dma.vmem_to_hbm [thread:$0]  %s311_s12, 256, %s575_s5, [#allocation5], %s520_s4, %s520_s4, %s521_s13  }
 0x116   :  { %510 = dma.done.wait [#allocation5], 256  }
 0x117   :  { %511 = vsyncadd [#allocation5], 4294967040 }
 0x118   :  { %320 = vsyncpa [#allocation4], 1 }
 0x119   :  { %321 = vsyncpa [#allocation7], 1 }
 0x11a   :  { %322 = vsyncpa [#allocation5], 1 }

</bundles_post_ra>
